<compile_context>
chip_gen: v6e
topology: v6e:2x2x1
jax: 0.10.0
libtpu: 0.0.40
codegen_flags: <defaults>
</compile_context>

<pallas_src>
import functools

import jax
import jax.numpy as jnp
from jax.experimental import pallas as pl
from jax.experimental.pallas import tpu as pltpu


# ----------------------------- configuration -------------------------------
class Args:
    hiddens = [32, 32]        # args.hiddens
    output_type = "tanh"      # 'tanh' or anything else (no squash)
    tanh_gain = 2.0           # args.tanh_gain


INPUT_DIM = 4
OUTPUT_DIM = 2


def _cdiv(a, b):
    return -(-a // b)


def _round_up(n, m):
    return ((n + m - 1) // m) * m


# ------------------------------- kernel ------------------------------------
def _actor_kernel(num_layers, output_type, tanh_gain, output_dim, *refs):
    """Transposed layout: activations are (features, TB); batch on the lane axis.

    refs = (x_ref, w0, b0, ..., w_{L-2}, b_{L-2}, wLt, bL, out_ref)
      x_ref : (INPUT_DIM, TB)   f32   lane-dense input tile
      w_i   : (out_i, in_i)     bf16  hidden-layer weight (MXU operand, VMEM-resident)
      b_i   : (out_i, 1)        f32   bias column (lane-broadcast)
      wLt   : (in_L, out_dim)   f32   final-layer weight, pre-transposed (VPU path)
      bL    : (out_dim, 1)      f32
      out   : (OUTPUT_DIM, TB)  f32   lane-dense output tile
    """
    x_ref = refs[0]
    out_ref = refs[-1]
    param_refs = refs[1:-1]

    h = x_ref[...]                                        # (in, TB) f32
    # Hidden layers: y^T = W @ x^T + b on the MXU, bf16 operands, f32 accum.
    for i in range(num_layers - 1):                       # static, fully unrolled
        w = param_refs[2 * i][...]                        # (out, in) bf16
        b = param_refs[2 * i + 1][...]                    # (out, 1)  f32
        h = jnp.dot(w, h.astype(jnp.bfloat16),
                    preferred_element_type=jnp.float32) + b
        h = jnp.maximum(h, 0.0)                           # ReLU in f32 (VPU)

    # Final layer (M = output_dim = 2) off the MXU: per output row one
    # lane-broadcast multiply (VPU) + one sublane reduce (XLU) -- both slots
    # are nearly idle, so this removes ~40% of the MXU pushes for free.
    wlt_ref = param_refs[2 * (num_layers - 1)]            # (in_last, out_dim) f32
    bl_ref = param_refs[2 * (num_layers - 1) + 1]         # (out_dim, 1) f32
    for j in range(output_dim):                           # static, tiny
        col = wlt_ref[:, j:j + 1]                         # (in_last, 1) f32
        yj = jnp.sum(col * h, axis=0, keepdims=True)      # (1, TB) f32
        yj = yj + bl_ref[j:j + 1, :]
        if output_type == "tanh":
            yj = jnp.tanh(yj) * tanh_gain                 # EUP tanh, f32
        out_ref[j:j + 1, :] = yj.astype(out_ref.dtype)


# --------------------------- parameter packing ------------------------------
def prepare_params(weights, biases):
    """Pack params for the kernel.

    Hidden-layer weights -> bf16 (MXU operands). Final-layer weight is kept in
    f32 and pre-transposed to (in, out) for the VPU/XLU path. Biases -> f32
    columns (out, 1). In production these would be cast/stored once, not per call.
    """
    num_layers = len(weights)
    flat = []
    for i, (w, b) in enumerate(zip(weights, biases)):
        if i < num_layers - 1:
            flat.append(w.astype(jnp.bfloat16))           # (out, in) bf16
        else:
            flat.append(w.T.astype(jnp.float32))          # (in, out) f32
        flat.append(b.reshape(-1, 1).astype(jnp.float32)) # (out, 1) f32
    return flat


# ------------------------------- wrappers ------------------------------------
def actor_forward_t(x_t, weights, biases, args: Args, *, block_batch=8192):
    """Transposed-layout entry point: x_t is (INPUT_DIM, B) f32, lane-dense.

    Returns (OUTPUT_DIM, B) f32. Use this when the producer/consumer can keep
    the (feature, batch) layout, so no wrapper-side HBM transpose is needed.
    """
    num_layers = len(weights)
    batch = x_t.shape[1]

    # Balanced tile sizing: pad waste < 128 rows per step.
    n_steps = max(_cdiv(batch, block_batch), 1)
    # Megacore: make sure v7x's two TensorCores both get work (and that the
    # pipeline has >=2 steps) whenever there is enough batch to split.
    if n_steps == 1 and batch >= 256:
        n_steps = 2
    tb = _round_up(_cdiv(batch, n_steps), 128)
    batch_pad = n_steps * tb

    if batch_pad != batch:
        x_t = jnp.pad(x_t, ((0, 0), (0, batch_pad - batch)))

    flat_params = prepare_params(weights, biases)
    kernel = functools.partial(
        _actor_kernel, num_layers, args.output_type, float(args.tanh_gain),
        OUTPUT_DIM,
    )

    in_specs = [pl.BlockSpec((INPUT_DIM, tb), lambda i: (0, i))]
    for p in flat_params:
        # Constant index_map -> DMA'd once, VMEM-resident across all steps.
        in_specs.append(pl.BlockSpec(p.shape, lambda i: (0, 0)))

    compiler_kwargs = dict(dimension_semantics=("parallel",))
    if tb > 16 * 1024:
        # Only needed when the tile is pushed past ~16K rows: size for the
        # (hidden, TB) f32 intermediates + double-buffered I/O tiles + slack.
        hid = max(list(args.hiddens) + [INPUT_DIM, OUTPUT_DIM])
        est = 2 * hid * tb * 4 + 2 * (INPUT_DIM + OUTPUT_DIM) * tb * 4
        compiler_kwargs["vmem_limit_bytes"] = 2 * est + (8 << 20)

    out_t = pl.pallas_call(
        kernel,
        out_shape=jax.ShapeDtypeStruct((OUTPUT_DIM, batch_pad), jnp.float32),
        grid=(n_steps,),
        in_specs=in_specs,
        out_specs=pl.BlockSpec((OUTPUT_DIM, tb), lambda i: (0, i)),
        compiler_params=pltpu.CompilerParams(**compiler_kwargs),
    )(x_t, *flat_params)

    if batch_pad != batch:
        out_t = out_t[:, :batch]
    return out_t


def actor_forward(x, weights, biases, args: Args, *, block_batch=8192):
    """Standard (B, 4) -> (B, 2) interface (adds wrapper-side transposes)."""
    out_t = actor_forward_t(x.T, weights, biases, args, block_batch=block_batch)
    return out_t.T


# --------------------------- parameter init ---------------------------------
def init_params(key, args: Args):
    """PyTorch-layout params: W (out, in), b (out,), uniform(-1/sqrt(fan_in), ...)."""
    dims = [INPUT_DIM] + list(args.hiddens) + [OUTPUT_DIM]
    weights, biases = [], []
    for i in range(len(dims) - 1):
        fan_in, fan_out = dims[i], dims[i + 1]
        bound = 1.0 / (float(fan_in) ** 0.5)
        key, kw, kb = jax.random.split(key, 3)
        w = jax.random.uniform(kw, (fan_out, fan_in), jnp.float32, -bound, bound)
        b = jax.random.uniform(kb, (fan_out,), jnp.float32, -bound, bound)
        weights.append(w)
        biases.append(b)
    return weights, biases


# ------------------------ pure-JAX reference (check) -------------------------
def actor_reference(x, weights, biases, args: Args):
    h = x
    n = len(weights)
    for i in range(n):
        h = h @ weights[i].T + biases[i]
        if i < n - 1:
            h = jnp.maximum(h, 0.0)
    if args.output_type == "tanh":
        h = jnp.tanh(h) * args.tanh_gain
    return h


# --------------------------------- main --------------------------------------
if __name__ == "__main__":
    args = Args()
    key = jax.random.PRNGKey(0)
    key, kx = jax.random.split(key)
    weights, biases = init_params(key, args)

    # bf16 MXU operands -> tolerance loosened vs. the exact-f32 reference.
    TOL = dict(atol=5e-2, rtol=5e-2)

    # 1) Small batch: single grid step, one 128-lane tile.
    batch = 64
    x = jax.random.normal(kx, (batch, INPUT_DIM), jnp.float32)
    out = jax.block_until_ready(actor_forward(x, weights, biases, args))
    ref = actor_reference(x, weights, biases, args)
    assert out.shape == (batch, OUTPUT_DIM)
    assert jnp.allclose(out, ref, **TOL), "mismatch vs reference (single tile)"

    # 2) Ragged batch, multi-step grid (padding + VMEM-resident weights).
    key, kx2 = jax.random.split(key)
    batch2 = 300
    x2 = jax.random.normal(kx2, (batch2, INPUT_DIM), jnp.float32)
    out2 = jax.block_until_ready(
        actor_forward(x2, weights, biases, args, block_batch=128)
    )
    ref2 = actor_reference(x2, weights, biases, args)
    assert out2.shape == (batch2, OUTPUT_DIM)
    assert jnp.allclose(out2, ref2, **TOL), "mismatch vs reference (multi tile)"

    # 3) Default block_batch: batch >= 256 is split into 2 steps (megacore path).
    out3 = jax.block_until_ready(actor_forward(x2, weights, biases, args))
    assert jnp.allclose(out3, ref2, **TOL), "mismatch vs reference (2-step split)"

    # 4) Transposed-I/O entry point (no wrapper-side transposes).
    out4_t = jax.block_until_ready(actor_forward_t(x2.T, weights, biases, args))
    assert out4_t.shape == (OUTPUT_DIM, batch2)
    assert jnp.allclose(out4_t.T, ref2, **TOL), "mismatch vs reference (transposed IO)"

    print("KERNEL_OK")
</pallas_src>

<mosaic_0001>
module attributes {stable_mosaic.version = 11 : i64} {
  func.func @_actor_kernel(%arg0: i32, %arg1: memref<4x128xf32, #tpu.memory_space<vmem>>, %arg2: memref<32x4xbf16, #tpu.memory_space<vmem>>, %arg3: memref<32x1xf32, #tpu.memory_space<vmem>>, %arg4: memref<32x32xbf16, #tpu.memory_space<vmem>>, %arg5: memref<32x1xf32, #tpu.memory_space<vmem>>, %arg6: memref<32x2xf32, #tpu.memory_space<vmem>>, %arg7: memref<2x1xf32, #tpu.memory_space<vmem>>, %arg8: memref<2x128xf32, #tpu.memory_space<vmem>>) attributes {dimension_semantics = [#tpu.dimension_semantics<parallel>], iteration_bounds = array<i64: 1>, scalar_prefetch = 0 : i64, scratch_operands = 0 : i64, tpu.core_type = #tpu.core_type<tc>, window_params = [{transform_indices = @transform_0, window_bounds = array<i64: 4, 128>}, {pipeline_mode = #tpu.pipeline_mode<synchronous>, transform_indices = @transform_1, window_bounds = array<i64: 32, 4>}, {pipeline_mode = #tpu.pipeline_mode<synchronous>, transform_indices = @transform_2, window_bounds = array<i64: 32, 1>}, {pipeline_mode = #tpu.pipeline_mode<synchronous>, transform_indices = @transform_3, window_bounds = array<i64: 32, 32>}, {pipeline_mode = #tpu.pipeline_mode<synchronous>, transform_indices = @transform_4, window_bounds = array<i64: 32, 1>}, {pipeline_mode = #tpu.pipeline_mode<synchronous>, transform_indices = @transform_5, window_bounds = array<i64: 32, 2>}, {pipeline_mode = #tpu.pipeline_mode<synchronous>, transform_indices = @transform_6, window_bounds = array<i64: 2, 1>}, {transform_indices = @transform_7, window_bounds = array<i64: 2, 128>}]} {
    %c0 = arith.constant 0 : index
    %c0_0 = arith.constant 0 : index
    %0 = vector.load %arg1[%c0, %c0_0] : memref<4x128xf32, #tpu.memory_space<vmem>>, vector<4x128xf32>
    %c0_1 = arith.constant 0 : index
    %c0_2 = arith.constant 0 : index
    %1 = vector.load %arg2[%c0_1, %c0_2] : memref<32x4xbf16, #tpu.memory_space<vmem>>, vector<32x4xbf16>
    %c0_3 = arith.constant 0 : index
    %c0_4 = arith.constant 0 : index
    %2 = vector.load %arg3[%c0_3, %c0_4] : memref<32x1xf32, #tpu.memory_space<vmem>>, vector<32x1xf32>
    %3 = arith.truncf %0 : vector<4x128xf32> to vector<4x128xbf16>
    %cst = arith.constant dense<0.000000e+00> : vector<32x128xf32>
    %4 = tpu.matmul %1, %3, %cst {dimension_numbers = #tpu.dot_dimension_numbers<[1], [0], [0], [1], [0, 0, 1, 1], [], []>} : vector<32x4xbf16>, vector<4x128xbf16>, vector<32x128xf32> -> vector<32x128xf32>
    %5 = vector.broadcast %2 : vector<32x1xf32> to vector<32x128xf32>
    %6 = arith.addf %4, %5 : vector<32x128xf32>
    %cst_5 = arith.constant 0.000000e+00 : f32
    %7 = vector.broadcast %cst_5 : f32 to vector<32x128xf32>
    %8 = arith.maximumf %6, %7 : vector<32x128xf32>
    %c0_6 = arith.constant 0 : index
    %c0_7 = arith.constant 0 : index
    %9 = vector.load %arg4[%c0_6, %c0_7] : memref<32x32xbf16, #tpu.memory_space<vmem>>, vector<32x32xbf16>
    %c0_8 = arith.constant 0 : index
    %c0_9 = arith.constant 0 : index
    %10 = vector.load %arg5[%c0_8, %c0_9] : memref<32x1xf32, #tpu.memory_space<vmem>>, vector<32x1xf32>
    %11 = arith.truncf %8 : vector<32x128xf32> to vector<32x128xbf16>
    %cst_10 = arith.constant dense<0.000000e+00> : vector<32x128xf32>
    %12 = tpu.matmul %9, %11, %cst_10 {dimension_numbers = #tpu.dot_dimension_numbers<[1], [0], [0], [1], [0, 0, 1, 1], [], []>} : vector<32x32xbf16>, vector<32x128xbf16>, vector<32x128xf32> -> vector<32x128xf32>
    %13 = vector.broadcast %10 : vector<32x1xf32> to vector<32x128xf32>
    %14 = arith.addf %12, %13 : vector<32x128xf32>
    %cst_11 = arith.constant 0.000000e+00 : f32
    %15 = vector.broadcast %cst_11 : f32 to vector<32x128xf32>
    %16 = arith.maximumf %14, %15 : vector<32x128xf32>
    %c0_12 = arith.constant 0 : index
    %c0_13 = arith.constant 0 : index
    %17 = vector.load %arg6[%c0_12, %c0_13] : memref<32x2xf32, #tpu.memory_space<vmem>>, vector<32x1xf32>
    %18 = vector.broadcast %17 : vector<32x1xf32> to vector<32x128xf32>
    %19 = arith.mulf %18, %16 : vector<32x128xf32>
    %cst_14 = arith.constant dense<0.000000e+00> : vector<128xf32>
    %20 = vector.multi_reduction <add>, %19, %cst_14 [0] : vector<32x128xf32> to vector<128xf32>
    %21 = vector.shape_cast %20 : vector<128xf32> to vector<1x128xf32>
    %c0_15 = arith.constant 0 : index
    %c0_16 = arith.constant 0 : index
    %22 = vector.load %arg7[%c0_15, %c0_16] : memref<2x1xf32, #tpu.memory_space<vmem>>, vector<1x1xf32>
    %23 = vector.broadcast %22 : vector<1x1xf32> to vector<1x128xf32>
    %24 = arith.addf %21, %23 : vector<1x128xf32>
    %25 = math.tanh %24 : vector<1x128xf32>
    %cst_17 = arith.constant 2.000000e+00 : f32
    %26 = vector.broadcast %cst_17 : f32 to vector<1x128xf32>
    %27 = arith.mulf %25, %26 : vector<1x128xf32>
    %c0_18 = arith.constant 0 : index
    %c0_19 = arith.constant 0 : index
    %28 = vector.load %arg8[%c0_18, %c0_19] : memref<2x128xf32, #tpu.memory_space<vmem>>, vector<1x128xf32>
    tpu.vector_store %arg8[%c0_18, %c0_19], %27 {strides = array<i32>} : memref<2x128xf32, #tpu.memory_space<vmem>>, vector<1x128xf32>,
    %c0_20 = arith.constant 0 : index
    %c1 = arith.constant 1 : index
    %29 = vector.load %arg6[%c0_20, %c1] : memref<32x2xf32, #tpu.memory_space<vmem>>, vector<32x1xf32>
    %30 = vector.broadcast %29 : vector<32x1xf32> to vector<32x128xf32>
    %31 = arith.mulf %30, %16 : vector<32x128xf32>
    %cst_21 = arith.constant dense<0.000000e+00> : vector<128xf32>
    %32 = vector.multi_reduction <add>, %31, %cst_21 [0] : vector<32x128xf32> to vector<128xf32>
    %33 = vector.shape_cast %32 : vector<128xf32> to vector<1x128xf32>
    %c1_22 = arith.constant 1 : index
    %c0_23 = arith.constant 0 : index
    %34 = vector.load %arg7[%c1_22, %c0_23] : memref<2x1xf32, #tpu.memory_space<vmem>>, vector<1x1xf32>
    %35 = vector.broadcast %34 : vector<1x1xf32> to vector<1x128xf32>
    %36 = arith.addf %33, %35 : vector<1x128xf32>
    %37 = math.tanh %36 : vector<1x128xf32>
    %cst_24 = arith.constant 2.000000e+00 : f32
    %38 = vector.broadcast %cst_24 : f32 to vector<1x128xf32>
    %39 = arith.mulf %37, %38 : vector<1x128xf32>
    %c1_25 = arith.constant 1 : index
    %c0_26 = arith.constant 0 : index
    %40 = vector.load %arg8[%c1_25, %c0_26] : memref<2x128xf32, #tpu.memory_space<vmem>>, vector<1x128xf32>
    tpu.vector_store %arg8[%c1_25, %c0_26], %39 {strides = array<i32>} : memref<2x128xf32, #tpu.memory_space<vmem>>, vector<1x128xf32>,
    return
  }
  func.func @transform_0(%arg0: i32) -> (i32, i32) {
    %c0_i32 = arith.constant 0 : i32
    %c0_i32_0 = arith.constant 0 : i32
    return %c0_i32, %arg0 : i32, i32
  }
  func.func @transform_1(%arg0: i32) -> (i32, i32) {
    %c0_i32 = arith.constant 0 : i32
    %c0_i32_0 = arith.constant 0 : i32
    %c0_i32_1 = arith.constant 0 : i32
    return %c0_i32, %c0_i32_0 : i32, i32
  }
  func.func @transform_2(%arg0: i32) -> (i32, i32) {
    %c0_i32 = arith.constant 0 : i32
    %c0_i32_0 = arith.constant 0 : i32
    %c0_i32_1 = arith.constant 0 : i32
    return %c0_i32, %c0_i32_0 : i32, i32
  }
  func.func @transform_3(%arg0: i32) -> (i32, i32) {
    %c0_i32 = arith.constant 0 : i32
    %c0_i32_0 = arith.constant 0 : i32
    %c0_i32_1 = arith.constant 0 : i32
    return %c0_i32, %c0_i32_0 : i32, i32
  }
  func.func @transform_4(%arg0: i32) -> (i32, i32) {
    %c0_i32 = arith.constant 0 : i32
    %c0_i32_0 = arith.constant 0 : i32
    %c0_i32_1 = arith.constant 0 : i32
    return %c0_i32, %c0_i32_0 : i32, i32
  }
  func.func @transform_5(%arg0: i32) -> (i32, i32) {
    %c0_i32 = arith.constant 0 : i32
    %c0_i32_0 = arith.constant 0 : i32
    %c0_i32_1 = arith.constant 0 : i32
    return %c0_i32, %c0_i32_0 : i32, i32
  }
  func.func @transform_6(%arg0: i32) -> (i32, i32) {
    %c0_i32 = arith.constant 0 : i32
    %c0_i32_0 = arith.constant 0 : i32
    %c0_i32_1 = arith.constant 0 : i32
    return %c0_i32, %c0_i32_0 : i32, i32
  }
  func.func @transform_7(%arg0: i32) -> (i32, i32) {
    %c0_i32 = arith.constant 0 : i32
    %c0_i32_0 = arith.constant 0 : i32
    return %c0_i32, %arg0 : i32, i32
  }
}

</mosaic_0001>

<bundles_post_ra>
// kernel: tpu_custom_call.1
= control target key start
LH: loop header
LB: loop body
LE: loop exit
PB: predicated region body
PF: predicated region fallthrough
CT: control target
= control target key end

     0   :  { %vm75_vm0 = vcmask 1041408   ;;  %vm68_vm1 = vcmask 31744   ;;  %v409_v6 = vmov 0   ;;  %s514_s0 = inlined_call_operand.vmem [shape: f32[4,128], index: 0, kind: input, shape index: {}]   ;;  %s515_s1 = inlined_call_operand.vmem [shape: bf16[32,4], index: 1, kind: input, shape index: {}]   ;;  %s516_s2 = inlined_call_operand.vmem [shape: f32[32,1], index: 2, kind: input, shape index: {}]   ;;  %s517_s3 = inlined_call_operand.vmem [shape: bf16[32,32], index: 3, kind: input, shape index: {}]   ;;  %s518_s4 = inlined_call_operand.vmem [shape: f32[32,1], index: 4, kind: input, shape index: {}]   ;;  %s519_s5 = inlined_call_operand.vmem [shape: f32[32,2], index: 5, kind: input, shape index: {}]   ;;  %s520_s6 = inlined_call_operand.vmem [shape: f32[2,1], index: 6, kind: input, shape index: {}]   ;;  %s521_s7 = inlined_call_operand.hbm [shape: f32[2,128], index: 7, kind: output, shape index: {}]  }
   0x1   :  { %v28_v0 = vld [vmem:[%s514_s0] sm:$0xf]  ;;  %v35_v3 = vld [vmem:[%s516_s2 + $0x10] sm:$0xff]  ;;  %v380_v5 = vld [vmem:[%s515_s1 + $0x8] sm:$0xff]   ;;  %373 = vset.pattern.permute.xlu0 %v409_v6  ;;  %374 = vset.pattern.permute.xlu1 %v409_v6 }
   0x2   :  { %v379_v1 = vld [vmem:[%s515_s1] sm:$0xff]   ;;  %v37_v2 = vpack.c.bf16 %v28_v0, %v28_v0  ;;  %50 = vperm.xlu0 %373, %v35_v3   ;;  %v36_v8 = vld [vmem:[%s516_s2 + $0x18] sm:$0xff]  ;;  %v34_v9 = vld [vmem:[%s516_s2 + $0x8] sm:$0xff] }
   0x3   :  { %357 = vmatprep.mubr.msk.bf16.mxu0 %vm68_vm1, %v379_v1  ;;  %v33_v7 = vld [vmem:[%s516_s2] sm:$0xff] }
   0x4   :  { %369 = vmatprep.subr.msk.bf16.mxu0 %vm75_vm0, %v37_v2  ;;  %v77_v4 = vsel %vm75_vm0, %v37_v2, 0  ;;  %40 = vperm.xlu1 %374, %v33_v7  }
   0x5   :  { %356 = vmatpush3.bf16.msra.mxu0 %v77_v4 }
   0x8   :  { %358 = vmatmul.mubr.msk.bf16.vlgmr.msra.gmra.mxu0 %vm68_vm1, %v380_v5 }
   0x9   :  { %12 = vsyncpa [#allocation3], 0  ;;  %55 = vperm.xlu0 %373, %v36_v8   ;;  %v136_v10 = vld [vmem:[%s518_s4] sm:$0xff]  ;;  %45 = vperm.xlu1 %374, %v34_v9   ;;  %v137_v11 = vld [vmem:[%s518_s4 + $0x8] sm:$0xff]  ;;  %vm172_vm2 = vcmask 261120   ;;  %v410_v17 = vmov 1  }
   0xa   :  { %v138_v12 = vld [vmem:[%s518_s4 + $0x10] sm:$0xff]  ;;  %v139_v13 = vld [vmem:[%s518_s4 + $0x18] sm:$0xff]  ;;  %v232_v14 = vld [vmem:[%s519_s5] sm:$0xff] }
   0xb   :  { %v233_v15 = vld [vmem:[%s519_s5 + $0x8] sm:$0xff]  ;;  %v381_v16 = vld [vmem:[%s517_s3] sm:$0xff]   ;;  %v281_v18 = vld [vmem:[%s519_s5 + $0x10] sm:$0xff] }
   0xc   :  { %365 = vmatprep.mubr.msk.bf16.mxu1 %vm172_vm2, %v381_v16  ;;  %v282_v19 = vld [vmem:[%s519_s5 + $0x18] sm:$0xff]  ;;  %v269_v20 = vld [vmem:[%s520_s6] sm:$0x1]  ;;  %v316_v21 = vld [vmem:[%s520_s6 + $0x1] sm:$0x1] }
   0xd   :  { %144 = vperm.xlu0 %373, %v136_v10   ;;  %149 = vperm.xlu1 %374, %v137_v11   ;;  %v382_v40 = vld [vmem:[%s517_s3 + $0x8] sm:$0xff]   ;;  %s411_s3 = smov [#allocation2]  }
   0xe   :  { %s332_s9 = sshll.u32 %s411_s3, 4  ;;  %s333_s9 = int_to_ptr.vmem [resolvable:$true] %s332_s9 }
   0xf   :  { %s387_s10 = scalar_lea.vmem %s333_s9, 32  ;;  %p392_p1 = scmp.lt.s32.totalorder %s333_s9, %s333_s9 }
  0x10   :  { %p388_p0 = scmp.ne.s32.totalorder %s333_s9, %s387_s10  ;;  %p393_p2 = scmp.lt.s32.totalorder %s387_s10, %s387_s10 }
  0x11   :  { %154 = vperm.xlu0 %373, %v138_v12   ;;  %159 = vperm.xlu1 %374, %v139_v13  }
  0x12   :  { %p394_p3 = por %p393_p2, %p392_p1 }
  0x14   :  { %p395_p4 = pnand %p394_p3, %p388_p0 }
  0x15   :  { %238 = vperm.xlu0 %373, %v232_v14   ;;  %243 = vperm.xlu1 %374, %v233_v15  }
  0x19   :  { %376 = vset.pattern.permute.xlu1 %v410_v17  ;;  %375 = vset.pattern.permute.xlu0 %v410_v17 }
  0x1a   :  { %290 = vperm.xlu1 %376, %v233_v15   ;;  %285 = vperm.xlu0 %375, %v232_v14  }
  0x1e   :  { %377 = vset.pattern.permute.xlu1 %v409_v6  ;;  %295 = vperm.xlu0 %375, %v281_v18  }
  0x1f   :  { %248 = vperm.xlu1 %377, %v281_v18  }
  0x22   :  { %300 = vperm.xlu0 %375, %v282_v19  }
  0x23   :  { %253 = vperm.xlu1 %377, %v282_v19  }
  0x26   :  { %378 = vset.pattern.permute.xlu0 %v409_v6 }
  0x27   :  { %272 = vperm.xlu1 %377, %v269_v20   ;;  %319 = vperm.xlu0 %378, %v316_v21  }
  0x7d   :  { %v51_v22 = vpop.permute.xlu0 %50 }
  0x7f   :  { %v41_v23 = vpop.permute.xlu1 %40 }
  0x84   :  { %v56_v27 = vpop.permute.xlu0 %55  ;;  %v46_v31 = vpop.permute.xlu1 %45 }
  0x88   :  { %v145_v41 = vpop.permute.xlu0 %144  ;;  %v150_v42 = vpop.permute.xlu1 %149 }
  0x8c   :  { %v155_v43 = vpop.permute.xlu0 %154  ;;  %v160_v44 = vpop.permute.xlu1 %159 }
  0x90   :  { %v239_v45 = vpop.permute.xlu0 %238  ;;  %v244_v46 = vpop.permute.xlu1 %243 }
  0x95   :  { %v286_v48 = vpop.permute.xlu0 %285  ;;  %v291_v49 = vpop.permute.xlu1 %290 }
  0x99   :  { %v296_v58 = vpop.permute.xlu0 %295 }
  0x9a   :  { %v249_v59 = vpop.permute.xlu1 %248 }
  0x9d   :  { %v301_v7 = vpop.permute.xlu0 %300 }
  0x9e   :  { %v254_v8 = vpop.permute.xlu1 %253 }
  0xc8   :  { %v359_v24 = vpop.f32.mrf.mxu0 }
  0xc9   :  { %v122_v26 = vadd.f32 %v359_v24, %v51_v22 }
  0xca   :  { %v113_v25 = vpop.f32.mrf.mxu0 }
  0xcb   :  { %v114_v29 = vadd.f32 %v113_v25, %v41_v23  ;;  %v130_v33 = vmax.f32 %v122_v26, 0.0  ;;  %v320_v25 = vpop.permute.xlu0 %319 }
  0xcc   :  { %v360_v28 = vpop.f32.mrf.mxu0 }
  0xcd   :  { %v125_v30 = vadd.f32 %v360_v28, %v56_v27  ;;  %v128_v36 = vmax.f32 %v114_v29, 0.0  ;;  %v273_v28 = vpop.permute.xlu1 %272 }
  0xce   :  { %v116_v32 = vpop.f32.mrf.mxu0 }
  0xcf   :  { %v131_v34 = vmax.f32 %v125_v30, 0.0  ;;  %v117_v35 = vadd.f32 %v116_v32, %v46_v31 }
  0xd1   :  { %v129_v37 = vmax.f32 %v117_v35, 0.0  ;;  %v141_v38 = vpack.c.bf16 %v131_v34, %v130_v33 }
  0xd3   :  { %v140_v39 = vpack.c.bf16 %v129_v37, %v128_v36  ;;  %361 = vmatprep.subr.bf16.mxu1 %v141_v38 }
  0xd4   :  { %362 = vmatpush3.bf16.msra.mxu1 %v141_v38 }
  0xd5   :  { %363 = vmatprep.subr.bf16.mxu1 %v140_v39 }
  0xd8   :  { %364 = vmatpush3.bf16.msra.mxu1 %v140_v39 }
  0xdb   :  { %366 = vmatmul.mubr.msk.bf16.vlgmr.msra.gmra.mxu1 %vm172_vm2, %v382_v40 }
 0x19b   :  { %v367_v47 = vpop.f32.mrf.mxu1 }
 0x19c   :  { %v222_v53 = vadd.f32 %v367_v47, %v155_v43 }
 0x19d   :  { %v213_v50 = vpop.f32.mrf.mxu1 }
 0x19e   :  { %v214_v51 = vadd.f32 %v213_v50, %v145_v41  ;;  %v230_v60 = vmax.f32 %v222_v53, 0.0 }
 0x19f   :  { %v368_v52 = vpop.f32.mrf.mxu1 }
 0x1a0   :  { %v228_v54 = vmax.f32 %v214_v51, 0.0  ;;  %v225_v56 = vadd.f32 %v368_v52, %v160_v44  ;;  %v305_v3 = vmul.f32 %v296_v58, %v230_v60  ;;  %v258_v4 = vmul.f32 %v249_v59, %v230_v60 }
 0x1a1   :  { %v216_v55 = vpop.f32.mrf.mxu1 }
 0x1a2   :  { %v217_v57 = vadd.f32 %v216_v55, %v150_v42  ;;  %v256_v62 = vmul.f32 %v239_v45, %v228_v54  ;;  %v303_v63 = vmul.f32 %v286_v48, %v228_v54  ;;  %v231_v0 = vmax.f32 %v225_v56, 0.0 }
 0x1a4   :  { %v229_v61 = vmax.f32 %v217_v57, 0.0  ;;  %v306_v9 = vmul.f32 %v301_v7, %v231_v0  ;;  %v259_v10 = vmul.f32 %v254_v8, %v231_v0 }
 0x1a6   :  { %v257_v1 = vmul.f32 %v244_v46, %v229_v61  ;;  %v304_v2 = vmul.f32 %v291_v49, %v229_v61 }
 0x1a8   :  { %v260_v5 = vadd.f32 %v257_v1, %v256_v62  ;;  %v307_v6 = vadd.f32 %v304_v2, %v303_v63 }
 0x1aa   :  { %v261_v11 = vadd.f32 %v260_v5, %v258_v4  ;;  %v308_v12 = vadd.f32 %v307_v6, %v305_v3 }
 0x1ac   :  { %v262_v13 = vadd.f32 %v261_v11, %v259_v10  ;;  %v309_v14 = vadd.f32 %v308_v12, %v306_v9 }
 0x1ae   :  { %v263_v15 = vrot.slane %v262_v13, 4  ;;  %v310_v16 = vrot.slane %v309_v14, 4 }
 0x1b0   :  { %v264_v17 = vadd.f32 %v263_v15, %v262_v13  ;;  %v311_v18 = vadd.f32 %v310_v16, %v309_v14 }
 0x1b2   :  { %v265_v19 = vrot.slane %v264_v17, 2  ;;  %v312_v20 = vrot.slane %v311_v18, 2 }
 0x1b4   :  { %v266_v21 = vadd.f32 %v265_v19, %v264_v17  ;;  %v313_v22 = vadd.f32 %v312_v20, %v311_v18 }
 0x1b6   :  { %v267_v23 = vrot.slane %v266_v21, 1  ;;  %v314_v24 = vrot.slane %v313_v22, 1 }
 0x1b8   :  { %v268_v26 = vadd.f32 %v267_v23, %v266_v21  ;;  %v315_v27 = vadd.f32 %v314_v24, %v313_v22 }
 0x1ba   :  { %v275_v29 = vadd.f32 %v273_v28, %v268_v26  ;;  %v322_v30 = vadd.f32 %v320_v25, %v315_v27 }
 0x1bc   :  { %383 = vtanh.f32 %v275_v29 }
 0x1bd   :  { %385 = vtanh.f32 %v322_v30 }
 0x1c9   :  { %v384_v31 = vpop.eup %383 }
 0x1ca   :  { %v386_v32 = vpop.eup %385  ;;  %v277_v33 = vmul.f32 2.0, %v384_v31 }
 0x1cb   :  { %v324_v34 = vmul.f32 2.0, %v386_v32 }
 0x1cc   :  { %278 = vst [vmem:[#allocation2] sm:$0x1] %v277_v33 }
 0x1cd   :  { %325 = vst [vmem:[#allocation2 + $0x1] sm:$0x1] %v324_v34 }
 0x1ce   :  { %398 = shalt.err (!%p395_p4)
}
 0x1cf   :  { %335 = dma.vmem_to_hbm [thread:$0]  %s333_s9, 32, %s521_s7, [#allocation3]  }
 0x1d0   :  { %407 = dma.done.wait [#allocation3], 32  }
 0x1d1   :  { %408 = vsyncadd [#allocation3], 4294967264 }
 0x1d2   :  { %339 = vsyncpa [#allocation3], 1 }

</bundles_post_ra>
